<compile_context>
chip_gen: v7x
topology: tpu7x:2x2x1
jax: 0.10.0
libtpu: 0.0.40
codegen_flags: <defaults>
</compile_context>

<pallas_src>
import math
import jax
import jax.numpy as jnp
from jax.experimental import pallas as pl
from jax.experimental.pallas import tpu as pltpu


def _make_dense_block_kernel(num_layers, cin, growth, c_pad):
    c_final = cin + num_layers * growth

    def kernel(x_ref, w_ref, b_ref, o_ref, slab_ref):
        # Zero the padded slab once (stale VMEM could hold NaN/Inf, and layer 0
        # reads the full C_pad width), then drop the input features into the
        # first `cin` columns.
        slab_ref[...] = jnp.zeros_like(slab_ref)
        slab_ref[:, :cin] = x_ref[...]

        # num_layers is a Python int -> fully unrolled; every slice is static,
        # so the LLO scheduler sees one straight-line pipeline of matmuls.
        for i in range(num_layers):
            w_i = w_ref[i]          # (c_pad, growth); rows >= cin + i*growth are zero
            b_i = b_ref[i]          # (1, growth)
            y = jnp.dot(slab_ref[...], w_i, preferred_element_type=jnp.float32)
            y = jnp.tanh(y + b_i)
            off = cin + i * growth
            slab_ref[:, off:off + growth] = y.astype(slab_ref.dtype)

        # Single writeback of the finished activation slab (input + all layer outputs).
        o_ref[...] = slab_ref[:, :c_final].astype(o_ref.dtype)

    return kernel


def dense_block_pallas(x, params, *, batch_tile=None):
    """Fused DenseBlock forward.

    x:      (B, Cin) float32
    params: list of (W_i, b_i) with W_i: (Cin + i*G, G), b_i: (G,)
    returns (B, Cin + L*G) float32 == concat([x, tanh-layer outputs ...], axis=1)
    """
    B, cin = x.shape
    L = len(params)
    G = params[0][0].shape[1]
    c_final = cin + L * G
    c_pad = ((c_final + 127) // 128) * 128  # lane-aligned K for slab / packed weights

    # Pack per-layer weights into one zero-padded (L, c_pad, G) tensor, biases into (L, 1, G).
    w_pack = jnp.zeros((L, c_pad, G), jnp.float32)
    for i, (w, _) in enumerate(params):
        w_pack = w_pack.at[i, : w.shape[0], :].set(w.astype(jnp.float32))
    b_pack = jnp.stack([b.astype(jnp.float32) for (_, b) in params]).reshape(L, 1, G)

    # Pick a batch tile that divides B (keeps blocks full and stores unmasked on
    # the sublane axis); prefer the largest tile that comfortably fits VMEM.
    if batch_tile is None:
        bt = B
        for cand in (1024, 512, 256, 128, 64, 32, 16, 8):
            if B >= cand and B % cand == 0:
                bt = cand
                break
    else:
        bt = batch_tile
    assert B % bt == 0, "batch tile must divide batch"
    grid = (B // bt,)

    kernel = _make_dense_block_kernel(L, cin, G, c_pad)

    flops = 2 * B * c_pad * G * L
    bytes_accessed = 4 * (B * cin + B * c_final + L * c_pad * G + L * G)

    return pl.pallas_call(
        kernel,
        out_shape=jax.ShapeDtypeStruct((B, c_final), x.dtype),
        grid_spec=pltpu.PrefetchScalarGridSpec(
            num_scalar_prefetch=0,
            grid=grid,
            in_specs=[
                pl.BlockSpec((bt, cin), lambda i: (i, 0)),          # activations: tiled over batch
                pl.BlockSpec((L, c_pad, G), lambda i: (0, 0, 0)),   # packed weights: VMEM-resident
                pl.BlockSpec((L, 1, G), lambda i: (0, 0, 0)),       # packed biases: VMEM-resident
            ],
            out_specs=pl.BlockSpec((bt, c_final), lambda i: (i, 0)),
            scratch_shapes=[pltpu.VMEM((bt, c_pad), jnp.float32)],  # growing activation slab
        ),
        compiler_params=pltpu.CompilerParams(
            dimension_semantics=("parallel",),
        ),
        cost_estimate=pl.CostEstimate(
            flops=flops, transcendentals=B * G * L, bytes_accessed=bytes_accessed
        ),
    )(x, w_pack, b_pack)


def init_dense_block_params(key, num_layers, num_input_features, growth_rate):
    """Deterministic params matching nn.Linear shapes/init style (uniform +-1/sqrt(fan_in))."""
    params = []
    for i in range(num_layers):
        in_ch = num_input_features + growth_rate * i
        key, kw, kb = jax.random.split(key, 3)
        bound = 1.0 / math.sqrt(in_ch)
        # Stored as (in_ch, growth_rate) == torch weight (growth_rate, in_ch) transposed.
        w = jax.random.uniform(kw, (in_ch, growth_rate), jnp.float32, -bound, bound)
        b = jax.random.uniform(kb, (growth_rate,), jnp.float32, -bound, bound)
        params.append((w, b))
    return params


def dense_block_reference(x, params):
    out = x
    for (w, b) in params:
        out = jnp.concatenate([out, jnp.tanh(out @ w + b)], axis=1)
    return out


if __name__ == "__main__":
    # Small, module-consistent shapes (2-D input path of DenseLayer.forward).
    batch = 8
    num_input_features = 32
    growth_rate = 16
    num_layers = 3

    key = jax.random.PRNGKey(0)
    key, kx = jax.random.split(key)
    x = jax.random.normal(kx, (batch, num_input_features), jnp.float32)

    params = init_dense_block_params(key, num_layers, num_input_features, growth_rate)

    out = dense_block_pallas(x, params)
    out = jax.block_until_ready(out)

    # Sanity check against a pure-JAX reference.
    ref = dense_block_reference(x, params)
    assert out.shape == (batch, num_input_features + growth_rate * num_layers)
    assert jnp.allclose(out, ref, atol=1e-5, rtol=1e-5)

    print("KERNEL_OK")
</pallas_src>

<mosaic_0001>
module attributes {stable_mosaic.version = 11 : i64} {
  func.func @kernel(%arg0: i32, %arg1: memref<8x32xf32, #tpu.memory_space<vmem>>, %arg2: memref<3x128x16xf32, #tpu.memory_space<vmem>>, %arg3: memref<3x1x16xf32, #tpu.memory_space<vmem>>, %arg4: memref<8x80xf32, #tpu.memory_space<vmem>>, %arg5: memref<8x128xf32, #tpu.memory_space<vmem>>) attributes {dimension_semantics = [#tpu.dimension_semantics<parallel>], iteration_bounds = array<i64: 1>, scalar_prefetch = 0 : i64, scratch_operands = 1 : i64, tpu.core_type = #tpu.core_type<tc>, window_params = [{transform_indices = @transform_0, window_bounds = array<i64: 8, 32>}, {pipeline_mode = #tpu.pipeline_mode<synchronous>, transform_indices = @transform_1, window_bounds = array<i64: 3, 128, 16>}, {pipeline_mode = #tpu.pipeline_mode<synchronous>, transform_indices = @transform_2, window_bounds = array<i64: 3, 1, 16>}, {transform_indices = @transform_3, window_bounds = array<i64: 8, 80>}]} {
    %cst = arith.constant 0.000000e+00 : f32
    %0 = vector.broadcast %cst : f32 to vector<8x128xf32>
    %c0 = arith.constant 0 : index
    %c0_0 = arith.constant 0 : index
    %1 = vector.load %arg5[%c0, %c0_0] : memref<8x128xf32, #tpu.memory_space<vmem>>, vector<8x128xf32>
    tpu.vector_store %arg5[%c0, %c0_0], %0 {strides = array<i32>} : memref<8x128xf32, #tpu.memory_space<vmem>>, vector<8x128xf32>,
    %c0_1 = arith.constant 0 : index
    %c0_2 = arith.constant 0 : index
    %2 = vector.load %arg1[%c0_1, %c0_2] : memref<8x32xf32, #tpu.memory_space<vmem>>, vector<8x32xf32>
    %c0_3 = arith.constant 0 : index
    %c0_4 = arith.constant 0 : index
    %3 = vector.load %arg5[%c0_3, %c0_4] : memref<8x128xf32, #tpu.memory_space<vmem>>, vector<8x32xf32>
    tpu.vector_store %arg5[%c0_3, %c0_4], %2 {strides = array<i32>} : memref<8x128xf32, #tpu.memory_space<vmem>>, vector<8x32xf32>,
    %c0_5 = arith.constant 0 : index
    %c0_6 = arith.constant 0 : index
    %c0_7 = arith.constant 0 : index
    %4 = vector.load %arg2[%c0_5, %c0_6, %c0_7] : memref<3x128x16xf32, #tpu.memory_space<vmem>>, vector<1x128x16xf32>
    %5 = vector.shape_cast %4 : vector<1x128x16xf32> to vector<128x16xf32>
    %c0_8 = arith.constant 0 : index
    %c0_9 = arith.constant 0 : index
    %c0_10 = arith.constant 0 : index
    %6 = vector.load %arg3[%c0_8, %c0_9, %c0_10] : memref<3x1x16xf32, #tpu.memory_space<vmem>>, vector<1x1x16xf32>
    %7 = vector.shape_cast %6 : vector<1x1x16xf32> to vector<1x16xf32>
    %c0_11 = arith.constant 0 : index
    %c0_12 = arith.constant 0 : index
    %8 = vector.load %arg5[%c0_11, %c0_12] : memref<8x128xf32, #tpu.memory_space<vmem>>, vector<8x128xf32>
    %cst_13 = arith.constant dense<0.000000e+00> : vector<8x16xf32>
    %9 = tpu.matmul %8, %5, %cst_13 {dimension_numbers = #tpu.dot_dimension_numbers<[1], [0], [0], [1], [0, 0, 1, 1], [], []>} : vector<8x128xf32>, vector<128x16xf32>, vector<8x16xf32> -> vector<8x16xf32>
    %10 = vector.broadcast %7 : vector<1x16xf32> to vector<8x16xf32>
    %11 = arith.addf %9, %10 : vector<8x16xf32>
    %12 = math.tanh %11 : vector<8x16xf32>
    %c0_14 = arith.constant 0 : index
    %c32 = arith.constant 32 : index
    %13 = vector.load %arg5[%c0_14, %c32] : memref<8x128xf32, #tpu.memory_space<vmem>>, vector<8x16xf32>
    tpu.vector_store %arg5[%c0_14, %c32], %12 {strides = array<i32>} : memref<8x128xf32, #tpu.memory_space<vmem>>, vector<8x16xf32>,
    %c1 = arith.constant 1 : index
    %c0_15 = arith.constant 0 : index
    %c0_16 = arith.constant 0 : index
    %14 = vector.load %arg2[%c1, %c0_15, %c0_16] : memref<3x128x16xf32, #tpu.memory_space<vmem>>, vector<1x128x16xf32>
    %15 = vector.shape_cast %14 : vector<1x128x16xf32> to vector<128x16xf32>
    %c1_17 = arith.constant 1 : index
    %c0_18 = arith.constant 0 : index
    %c0_19 = arith.constant 0 : index
    %16 = vector.load %arg3[%c1_17, %c0_18, %c0_19] : memref<3x1x16xf32, #tpu.memory_space<vmem>>, vector<1x1x16xf32>
    %17 = vector.shape_cast %16 : vector<1x1x16xf32> to vector<1x16xf32>
    %c0_20 = arith.constant 0 : index
    %c0_21 = arith.constant 0 : index
    %18 = vector.load %arg5[%c0_20, %c0_21] : memref<8x128xf32, #tpu.memory_space<vmem>>, vector<8x128xf32>
    %cst_22 = arith.constant dense<0.000000e+00> : vector<8x16xf32>
    %19 = tpu.matmul %18, %15, %cst_22 {dimension_numbers = #tpu.dot_dimension_numbers<[1], [0], [0], [1], [0, 0, 1, 1], [], []>} : vector<8x128xf32>, vector<128x16xf32>, vector<8x16xf32> -> vector<8x16xf32>
    %20 = vector.broadcast %17 : vector<1x16xf32> to vector<8x16xf32>
    %21 = arith.addf %19, %20 : vector<8x16xf32>
    %22 = math.tanh %21 : vector<8x16xf32>
    %c0_23 = arith.constant 0 : index
    %c48 = arith.constant 48 : index
    %23 = vector.load %arg5[%c0_23, %c48] : memref<8x128xf32, #tpu.memory_space<vmem>>, vector<8x16xf32>
    tpu.vector_store %arg5[%c0_23, %c48], %22 {strides = array<i32>} : memref<8x128xf32, #tpu.memory_space<vmem>>, vector<8x16xf32>,
    %c2 = arith.constant 2 : index
    %c0_24 = arith.constant 0 : index
    %c0_25 = arith.constant 0 : index
    %24 = vector.load %arg2[%c2, %c0_24, %c0_25] : memref<3x128x16xf32, #tpu.memory_space<vmem>>, vector<1x128x16xf32>
    %25 = vector.shape_cast %24 : vector<1x128x16xf32> to vector<128x16xf32>
    %c2_26 = arith.constant 2 : index
    %c0_27 = arith.constant 0 : index
    %c0_28 = arith.constant 0 : index
    %26 = vector.load %arg3[%c2_26, %c0_27, %c0_28] : memref<3x1x16xf32, #tpu.memory_space<vmem>>, vector<1x1x16xf32>
    %27 = vector.shape_cast %26 : vector<1x1x16xf32> to vector<1x16xf32>
    %c0_29 = arith.constant 0 : index
    %c0_30 = arith.constant 0 : index
    %28 = vector.load %arg5[%c0_29, %c0_30] : memref<8x128xf32, #tpu.memory_space<vmem>>, vector<8x128xf32>
    %cst_31 = arith.constant dense<0.000000e+00> : vector<8x16xf32>
    %29 = tpu.matmul %28, %25, %cst_31 {dimension_numbers = #tpu.dot_dimension_numbers<[1], [0], [0], [1], [0, 0, 1, 1], [], []>} : vector<8x128xf32>, vector<128x16xf32>, vector<8x16xf32> -> vector<8x16xf32>
    %30 = vector.broadcast %27 : vector<1x16xf32> to vector<8x16xf32>
    %31 = arith.addf %29, %30 : vector<8x16xf32>
    %32 = math.tanh %31 : vector<8x16xf32>
    %c0_32 = arith.constant 0 : index
    %c64 = arith.constant 64 : index
    %33 = vector.load %arg5[%c0_32, %c64] : memref<8x128xf32, #tpu.memory_space<vmem>>, vector<8x16xf32>
    tpu.vector_store %arg5[%c0_32, %c64], %32 {strides = array<i32>} : memref<8x128xf32, #tpu.memory_space<vmem>>, vector<8x16xf32>,
    %c0_33 = arith.constant 0 : index
    %c0_34 = arith.constant 0 : index
    %34 = vector.load %arg5[%c0_33, %c0_34] : memref<8x128xf32, #tpu.memory_space<vmem>>, vector<8x80xf32>
    %c0_35 = arith.constant 0 : index
    %c0_36 = arith.constant 0 : index
    %35 = vector.load %arg4[%c0_35, %c0_36] : memref<8x80xf32, #tpu.memory_space<vmem>>, vector<8x80xf32>
    tpu.vector_store %arg4[%c0_35, %c0_36], %34 {strides = array<i32>} : memref<8x80xf32, #tpu.memory_space<vmem>>, vector<8x80xf32>,
    return
  }
  func.func @transform_0(%arg0: i32) -> (i32, i32) {
    %c0_i32 = arith.constant 0 : i32
    %c0_i32_0 = arith.constant 0 : i32
    return %arg0, %c0_i32 : i32, i32
  }
  func.func @transform_1(%arg0: i32) -> (i32, i32, i32) {
    %c0_i32 = arith.constant 0 : i32
    %c0_i32_0 = arith.constant 0 : i32
    %c0_i32_1 = arith.constant 0 : i32
    %c0_i32_2 = arith.constant 0 : i32
    return %c0_i32, %c0_i32_0, %c0_i32_1 : i32, i32, i32
  }
  func.func @transform_2(%arg0: i32) -> (i32, i32, i32) {
    %c0_i32 = arith.constant 0 : i32
    %c0_i32_0 = arith.constant 0 : i32
    %c0_i32_1 = arith.constant 0 : i32
    %c0_i32_2 = arith.constant 0 : i32
    return %c0_i32, %c0_i32_0, %c0_i32_1 : i32, i32, i32
  }
  func.func @transform_3(%arg0: i32) -> (i32, i32) {
    %c0_i32 = arith.constant 0 : i32
    %c0_i32_0 = arith.constant 0 : i32
    return %arg0, %c0_i32 : i32, i32
  }
}

</mosaic_0001>

<bundles_post_ra>
// kernel: tpu_custom_call.1
= control target key start
LH: loop header
LB: loop body
LE: loop exit
PB: predicated region body
PF: predicated region fallthrough
CT: control target
= control target key end

     0   :  { %v645_v3 = vmov 0.0|0.0   ;;  %v646_v6 = vmov 0.0   ;;  %vm647_vm0 = vmmov 0   ;;  %vm17_vm1 = vcmask 261120   ;;  %s867_s0 = inlined_call_operand.vmem [shape: f32[8,32], index: 0, kind: input, shape index: {}]   ;;  %s868_s1 = inlined_call_operand.vmem [shape: f32[3,128,16], index: 1, kind: input, shape index: {}]   ;;  %s869_s2 = inlined_call_operand.vmem [shape: f32[3,1,16], index: 2, kind: input, shape index: {}]   ;;  %s870_s3 = inlined_call_operand.hbm [shape: f32[8,80], index: 3, kind: output, shape index: {}]  }
   0x1   :  { %v19_v0 = vld [vmem:[%s868_s1] sm:$0xff]  ;;  %v20_v1 = vld [vmem:[%s868_s1 + $0x8] sm:$0xff]  ;;  %v21_v2 = vld [vmem:[%s868_s1 + $0x10] sm:$0xff]  ;;  %536 = vmatprep.subr.bf16.mxu0 %v645_v3  ;;  %15 = vst [vmem:[#allocation2] sm:$0xff] %v646_v6  ;;  %560 = vmatprep.subr.bf16.mxu1 %v645_v3 }
   0x2   :  { %v537_v4 = vpack.c.bf16 %v20_v1, %v19_v0  ;;  %v22_v5 = vld [vmem:[%s868_s1 + $0x18] sm:$0xff]  ;;  %463 = vmatprep.mubr.msk.f32.mxu0 %vm647_vm0, %v646_v6  ;;  %498 = vmatprep.mubr.msk.f32.mxu1 %vm647_vm0, %v646_v6  ;;  %v23_v8 = vld [vmem:[%s868_s1 + $0x20] sm:$0xff]  ;;  %v24_v9 = vld [vmem:[%s868_s1 + $0x28] sm:$0xff] }
   0x3   :  { %v540_v7 = vpack.c.bf16 %v22_v5, %v21_v2  ;;  %v16_v10 = vld [vmem:[%s867_s0] sm:$0xff] }
   0x4   :  { %538 = vmatpush3.bf16.msra.mxu0 %v537_v4  ;;  %18 = vst.msk [vmem:[#allocation2] sm:$0xff] %vm17_vm1, %v16_v10 }
   0x5   :  { %539 = vmatprep.subr.bf16.mxu0 %v645_v3 }
   0x6   :  { %8 = vsyncpa [#allocation4], 0  ;;  %v543_v11 = vpack.c.bf16 %v24_v9, %v23_v8  ;;  %v25_v12 = vld [vmem:[%s868_s1 + $0x30] sm:$0xff]  ;;  %v26_v13 = vld [vmem:[%s868_s1 + $0x38] sm:$0xff]  ;;  %s648_s24 = smov 32   ;;  %vm118_vm2 = vcmask 392448  }
   0x7   :  { %v546_v14 = vpack.c.bf16 %v26_v13, %v25_v12  ;;  %v27_v15 = vld [vmem:[%s868_s1 + $0x40] sm:$0xff]  ;;  %v28_v16 = vld [vmem:[%s868_s1 + $0x48] sm:$0xff]  ;;  %v29_v18 = vld [vmem:[%s868_s1 + $0x50] sm:$0xff]  ;;  %s649_s0 = smov 48   ;;  %vm221_vm3 = vcmask 523648   ;;  %vm324_vm4 = vcmask 654848  }
   0x8   :  { %541 = vmatpush3.bf16.msra.mxu0 %v540_v7  ;;  %v549_v17 = vpack.c.bf16 %v28_v16, %v27_v15  ;;  %v30_v19 = vld [vmem:[%s868_s1 + $0x58] sm:$0xff]  ;;  %v31_v21 = vld [vmem:[%s868_s1 + $0x60] sm:$0xff]  ;;  %v32_v22 = vld [vmem:[%s868_s1 + $0x68] sm:$0xff]  ;;  %s651_s6 = smov [#allocation3]   ;;  %vm327_vm5 = vcmask 654336  }
   0x9   :  { %542 = vmatprep.subr.bf16.mxu0 %v645_v3  ;;  %v552_v20 = vpack.c.bf16 %v30_v19, %v29_v18  ;;  %v555_v23 = vpack.c.bf16 %v32_v22, %v31_v21  ;;  %v33_v24 = vld [vmem:[%s868_s1 + $0x70] sm:$0xff]  ;;  %v34_v25 = vld [vmem:[%s868_s1 + $0x78] sm:$0xff]  ;;  %v344_v28 = vld [vmem:[%s868_s1 + $0x80] sm:$0xff]  ;;  %s335_s7 = sshll.u32 %s651_s6, 4  ;;  %s336_s7 = int_to_ptr.vmem [resolvable:$true] %s335_s7 }
   0xa   :  { %v558_v26 = vpack.c.bf16 %v34_v25, %v33_v24  ;;  %v345_v29 = vld [vmem:[%s868_s1 + $0x88] sm:$0xff]  ;;  %v346_v30 = vld [vmem:[%s868_s1 + $0x90] sm:$0xff]  ;;  %v347_v32 = vld [vmem:[%s868_s1 + $0x98] sm:$0xff]  ;;  %s621_s8 = scalar_lea.vmem %s336_s7, 128  ;;  %p626_p1 = scmp.lt.s32.totalorder %s336_s7, %s336_s7 }
   0xb   :  { %v36_v27 = vld [vmem:[#allocation2] sm:$0xff]  ;;  %v561_v31 = vpack.c.bf16 %v345_v29, %v344_v28  ;;  %v564_v33 = vpack.c.bf16 %v347_v32, %v346_v30  ;;  %v349_v35 = vld [vmem:[%s868_s1 + $0xa8] sm:$0xff]  ;;  %v350_v37 = vld [vmem:[%s868_s1 + $0xb0] sm:$0xff]  ;;  %p622_p0 = scmp.ne.s32.totalorder %s336_s7, %s621_s8  ;;  %p627_p2 = scmp.lt.s32.totalorder %s621_s8, %s621_s8 }
   0xc   :  { %544 = vmatpush3.bf16.msra.mxu0 %v543_v11  ;;  %v348_v34 = vld [vmem:[%s868_s1 + $0xa0] sm:$0xff]  ;;  %v351_v38 = vld [vmem:[%s868_s1 + $0xb8] sm:$0xff]  ;;  %v353_v41 = vld [vmem:[%s868_s1 + $0xc8] sm:$0xff] }
   0xd   :  { %545 = vmatprep.subr.bf16.mxu0 %v645_v3  ;;  %562 = vmatpush3.bf16.msra.mxu1 %v561_v31  ;;  %v567_v36 = vpack.c.bf16 %v349_v35, %v348_v34  ;;  %v570_v39 = vpack.c.bf16 %v351_v38, %v350_v37  ;;  %v352_v40 = vld [vmem:[%s868_s1 + $0xc0] sm:$0xff]  ;;  %v354_v43 = vld [vmem:[%s868_s1 + $0xd0] sm:$0xff]  ;;  %v355_v44 = vld [vmem:[%s868_s1 + $0xd8] sm:$0xff]  ;;  %p628_p3 = por %p627_p2, %p626_p1 }
   0xe   :  { %563 = vmatprep.subr.bf16.mxu1 %v645_v3  ;;  %v573_v42 = vpack.c.bf16 %v353_v41, %v352_v40  ;;  %v576_v45 = vpack.c.bf16 %v355_v44, %v354_v43  ;;  %v343_v46 = vld [vmem:[%s869_s2] ss:$0 sm:$0xff]  ;;  %v357_v48 = vld [vmem:[%s868_s1 + $0xe8] sm:$0xff]  ;;  %v358_v53 = vld [vmem:[%s868_s1 + $0xf0] sm:$0xff] }
   0xf   :  { %v356_v47 = vld [vmem:[%s868_s1 + $0xe0] sm:$0xff]  ;;  %v359_v54 = vld [vmem:[%s868_s1 + $0xf8] sm:$0xff]  ;;  %v363_v60 = vld [vmem:[%s868_s1 + $0x108] sm:$0xff]  ;;  %p629_p4 = pnand %p628_p3, %p622_p0 }
  0x10   :  { %547 = vmatpush3.bf16.msra.mxu0 %v546_v14  ;;  %v579_v50 = vpack.c.bf16 %v357_v48, %v356_v47  ;;  %v582_v55 = vpack.c.bf16 %v359_v54, %v358_v53  ;;  %v362_v59 = vld [vmem:[%s868_s1 + $0x100] sm:$0xff]  ;;  %v364_v61 = vld [vmem:[%s868_s1 + $0x110] sm:$0xff]  ;;  %v365_v63 = vld [vmem:[%s868_s1 + $0x118] sm:$0xff] }
  0x11   :  { %548 = vmatprep.subr.bf16.mxu0 %v645_v3  ;;  %565 = vmatpush3.bf16.msra.mxu1 %v564_v33  ;;  %v585_v62 = vpack.c.bf16 %v363_v60, %v362_v59  ;;  %v588_v0 = vpack.c.bf16 %v365_v63, %v364_v61  ;;  %v366_v1 = vld [vmem:[%s868_s1 + $0x120] sm:$0xff]  ;;  %v367_v2 = vld [vmem:[%s868_s1 + $0x128] sm:$0xff]  ;;  %v368_v5 = vld [vmem:[%s868_s1 + $0x130] sm:$0xff] }
  0x12   :  { %566 = vmatprep.subr.bf16.mxu1 %v645_v3  ;;  %v591_v4 = vpack.c.bf16 %v367_v2, %v366_v1  ;;  %v370_v8 = vld [vmem:[%s868_s1 + $0x140] sm:$0xff]  ;;  %v371_v9 = vld [vmem:[%s868_s1 + $0x148] sm:$0xff]  ;;  %v372_v11 = vld [vmem:[%s868_s1 + $0x150] sm:$0xff] }
  0x13   :  { %v597_v10 = vpack.c.bf16 %v371_v9, %v370_v8  ;;  %v373_v12 = vld [vmem:[%s868_s1 + $0x158] sm:$0xff]  ;;  %v361_v14 = vld [vmem:[%s869_s2 + $0x1] ss:$0 sm:$0xff]  ;;  %v375_v16 = vld [vmem:[%s868_s1 + $0x168] sm:$0xff] }
  0x14   :  { %550 = vmatpush3.bf16.msra.mxu0 %v549_v17  ;;  %v600_v13 = vpack.c.bf16 %v373_v12, %v372_v11  ;;  %v374_v15 = vld [vmem:[%s868_s1 + $0x160] sm:$0xff]  ;;  %v376_v21 = vld [vmem:[%s868_s1 + $0x170] sm:$0xff]  ;;  %v377_v22 = vld [vmem:[%s868_s1 + $0x178] sm:$0xff] }
  0x15   :  { %551 = vmatprep.subr.bf16.mxu0 %v645_v3  ;;  %568 = vmatpush3.bf16.msra.mxu1 %v567_v36  ;;  %v603_v18 = vpack.c.bf16 %v375_v16, %v374_v15 }
  0x16   :  { %569 = vmatprep.subr.bf16.mxu1 %v645_v3 }
  0x18   :  { %553 = vmatpush3.bf16.msra.mxu0 %v552_v20 }
  0x19   :  { %554 = vmatprep.subr.bf16.mxu0 %v645_v3  ;;  %571 = vmatpush3.bf16.msra.mxu1 %v570_v39 }
  0x1a   :  { %572 = vmatprep.subr.bf16.mxu1 %v645_v3 }
  0x1c   :  { %556 = vmatpush3.bf16.msra.mxu0 %v555_v23  ;;  %v606_v23 = vpack.c.bf16 %v377_v22, %v376_v21 }
  0x1d   :  { %557 = vmatprep.subr.bf16.mxu0 %v645_v3  ;;  %574 = vmatpush3.bf16.msra.mxu1 %v573_v42 }
  0x1e   :  { %575 = vmatprep.subr.bf16.mxu1 %v645_v3 }
  0x20   :  { %559 = vmatpush3.bf16.msra.mxu0 %v558_v26 }
  0x21   :  { %584 = vmatprep.subr.bf16.mxu0 %v645_v3  ;;  %577 = vmatpush3.bf16.msra.mxu1 %v576_v45 }
  0x22   :  { %578 = vmatprep.subr.bf16.mxu1 %v645_v3 }
  0x23   :  { %464 = vmatmul.mubr.f32.vlgmr.msra.gmra.mrb[0].mxu0 %v36_v27  ;;  %v379_v27 = vld [vmem:[%s869_s2 + $0x2] ss:$0 sm:$0xff] }
  0x24   :  { %533 = vmatprep.mubr.msk.f32.mxu0 %vm647_vm0, %v646_v6  ;;  %586 = vmatpush3.bf16.msra.mxu0 %v585_v62  ;;  %v369_v6 = vld [vmem:[%s868_s1 + $0x138] sm:$0xff]  ;;  %s650_s1 = smov 64  }
  0x25   :  { %580 = vmatpush3.bf16.msra.mxu1 %v579_v50  ;;  %587 = vmatprep.subr.bf16.mxu0 %v645_v3  ;;  %v594_v7 = vpack.c.bf16 %v369_v6, %v368_v5 }
  0x26   :  { %581 = vmatprep.subr.bf16.mxu1 %v645_v3 }
  0x28   :  { %589 = vmatpush3.bf16.msra.mxu0 %v588_v0 }
  0x29   :  { %583 = vmatpush3.bf16.msra.mxu1 %v582_v55  ;;  %590 = vmatprep.subr.bf16.mxu0 %v645_v3 }
  0x2c   :  { %592 = vmatpush3.bf16.msra.mxu0 %v591_v4 }
  0x2d   :  { %593 = vmatprep.subr.bf16.mxu0 %v645_v3 }
  0x30   :  { %595 = vmatpush3.bf16.msra.mxu0 %v594_v7 }
  0x31   :  { %596 = vmatprep.subr.bf16.mxu0 %v645_v3 }
  0x34   :  { %598 = vmatpush3.bf16.msra.mxu0 %v597_v10 }
  0x35   :  { %599 = vmatprep.subr.bf16.mxu0 %v645_v3 }
  0x38   :  { %601 = vmatpush3.bf16.msra.mxu0 %v600_v13 }
  0x39   :  { %602 = vmatprep.subr.bf16.mxu0 %v645_v3 }
  0x3c   :  { %604 = vmatpush3.bf16.msra.mxu0 %v603_v18 }
  0x3d   :  { %605 = vmatprep.subr.bf16.mxu0 %v645_v3 }
  0x40   :  { %607 = vmatpush3.bf16.msra.mxu0 %v606_v23 }
  0xf6   :  { %v109_v49 = vpop.f32.mrb[0].mxu0 }
  0xf7   :  { %v110_v51 = vadd.f32 %v343_v46, %v109_v49  ;;  %v465_v52 = vpop.f32.mrb[1].mxu0 }
  0xf9   :  { %615 = vtanh.f32 %v110_v51 }
 0x103   :  { %v616_v56 = vpop.eup %615 }
 0x104   :  { %115 = vrot.lane.b32.xlu0 %v616_v56, %s648_s24 }
 0x176   :  { %v116_v57 = vpop.permute.xlu0 %115 }
 0x177   :  { %119 = vst.msk [vmem:[#allocation2] sm:$0xff] %vm118_vm2, %v116_v57 }
 0x17e   :  { %v139_v58 = vld [vmem:[#allocation2] sm:$0xff] }
 0x17f   :  { %499 = vmatmul.mubr.f32.vlgmr.msra.gmra.mrb[0].mxu1 %v139_v58 }
 0x252   :  { %v212_v17 = vpop.f32.mrb[0].mxu1 }
 0x253   :  { %v213_v19 = vadd.f32 %v361_v14, %v212_v17  ;;  %v500_v20 = vpop.f32.mrb[1].mxu1 }
 0x255   :  { %617 = vtanh.f32 %v213_v19 }
 0x25f   :  { %v618_v24 = vpop.eup %617 }
 0x260   :  { %218 = vrot.lane.b32.xlu0 %v618_v24, %s649_s0 }
 0x2d2   :  { %v219_v25 = vpop.permute.xlu0 %218 }
 0x2d3   :  { %222 = vst.msk [vmem:[#allocation2] sm:$0xff] %vm221_vm3, %v219_v25 }
 0x2da   :  { %v242_v26 = vld [vmem:[#allocation2] sm:$0xff] }
 0x2db   :  { %534 = vmatmul.mubr.f32.vlgmr.msra.gmra.mrb[2].mxu0 %v242_v26 }
 0x3ae   :  { %v315_v28 = vpop.f32.mrb[2].mxu0 }
 0x3af   :  { %v316_v29 = vadd.f32 %v379_v27, %v315_v28  ;;  %v535_v30 = vpop.f32.mrb[3].mxu0 }
 0x3b1   :  { %619 = vtanh.f32 %v316_v29 }
 0x3bb   :  { %v620_v31 = vpop.eup %619 }
 0x3bc   :  { %321 = vrot.lane.b32.xlu1 %v620_v31, %s650_s1 }
 0x42e   :  { %v322_v3 = vpop.permute.xlu1 %321 }
 0x42f   :  { %325 = vst.msk [vmem:[#allocation2] sm:$0xff] %vm324_vm4, %v322_v3 }
 0x436   :  { %v326_v32 = vld [vmem:[#allocation2] sm:$0xff] }
 0x437   :  { %328 = vst.msk [vmem:[#allocation3] sm:$0xff] %vm327_vm5, %v326_v32 }
 0x438   :  { %632 = shalt.err (!%p629_p4)
}
 0x439   :  { %s633_s10 = scalar_lea.hbm %s870_s3, 128 }
 0x43a   :  { %p634_p5 = scmp.ne.s32.totalorder %s870_s3, %s633_s10  ;;  %p637_p6 = scmp.lt.u32.totalorder %s633_s10, %s870_s3 }
 0x43c   :  { %p639_p7 = pnand %p637_p6, %p634_p5 }
 0x43e   :  { %642 = shalt.err (!%p639_p7)
}
 0x43f   :  { %338 = dma.vmem_to_hbm [thread:$0]  %s336_s7, 128, %s870_s3, [#allocation4]  }
 0x440   :  { %643 = dma.done.wait [#allocation4], 128  }
 0x441   :  { %644 = vsyncadd [#allocation4], 4294967168 }
 0x442   :  { %342 = vsyncpa [#allocation4], 1 }

</bundles_post_ra>
